<compile_context>
chip_gen: v6e
topology: v6e:2x2x1
jax: 0.10.0
libtpu: 0.0.40
codegen_flags: <defaults>
</compile_context>

<pallas_src>
import jax
import jax.numpy as jnp
from jax.experimental import pallas as pl
from jax.experimental.pallas import tpu as pltpu
from functools import partial


# ---------------------------------------------------------------------------
# Tiled single-layer kernel (general / large-graph path)
# ---------------------------------------------------------------------------
def _sage_layer_tiled_kernel(a_ref, invd_ref, xs_ref, xd_ref, w_ref, b_ref,
                             o_ref, acc_ref, *, apply_relu):
    """One SAGEConv(mean) layer, tiled over (dst-row blocks, src-K blocks).

    a_ref   : [tm, tk]        bf16 0/1 adjacency tile (dst, src)
    invd_ref: [tm, 1]         f32 1/max(in_degree,1) for the dst rows
    xs_ref  : [tk, Fin]       source-node features (streamed along k)
    xd_ref  : [tm, Fin]       destination-node features (self term)
    w_ref   : [2*Fin, Fout]   stacked [W_self; W_neigh]
    b_ref   : [1, Fout]       bias
    o_ref   : [tm, Fout]      output tile
    acc_ref : [tm, Fin] f32   scratch accumulator for sum_j A[i,j] * x[j]
    """
    k = pl.program_id(1)

    @pl.when(k == 0)
    def _():
        acc_ref[...] = jnp.zeros_like(acc_ref)

    # Neighbor-sum accumulation on the MXU (adjacency kept exact 0/1 in bf16,
    # cast to f32 in VMEM so the accumulation stays full precision).
    acc_ref[...] += jnp.dot(a_ref[...].astype(jnp.float32), xs_ref[...],
                            preferred_element_type=jnp.float32)

    @pl.when(k == pl.num_programs(1) - 1)
    def _():
        h_neigh = acc_ref[...] * invd_ref[...]          # mean aggregation (VPU)
        cat = jnp.concatenate([xd_ref[...], h_neigh], axis=1)   # [tm, 2*Fin]
        out = jnp.dot(cat, w_ref[...], preferred_element_type=jnp.float32)
        out = out + b_ref[...]
        if apply_relu:
            out = jnp.maximum(out, 0.0)
        o_ref[...] = out.astype(o_ref.dtype)


def _sage_layer_tiled(adj_bf16, inv_deg, x, w_stacked, bias, *, apply_relu,
                      tm, tk):
    n = adj_bf16.shape[0]
    f_in = x.shape[1]
    f_out = w_stacked.shape[1]
    grid = (n // tm, n // tk)
    kernel = partial(_sage_layer_tiled_kernel, apply_relu=apply_relu)
    return pl.pallas_call(
        kernel,
        out_shape=jax.ShapeDtypeStruct((n, f_out), jnp.float32),
        grid_spec=pltpu.PrefetchScalarGridSpec(
            num_scalar_prefetch=0,
            grid=grid,
            in_specs=[
                pl.BlockSpec((tm, tk), lambda i, k: (i, k)),          # adjacency
                pl.BlockSpec((tm, 1), lambda i, k: (i, 0)),           # inv degree
                pl.BlockSpec((tk, f_in), lambda i, k: (k, 0)),        # x (source)
                pl.BlockSpec((tm, f_in), lambda i, k: (i, 0)),        # x (dest/self)
                pl.BlockSpec((2 * f_in, f_out), lambda i, k: (0, 0)), # stacked W
                pl.BlockSpec((1, f_out), lambda i, k: (0, 0)),        # bias
            ],
            out_specs=pl.BlockSpec((tm, f_out), lambda i, k: (i, 0)),
            scratch_shapes=[pltpu.VMEM((tm, f_in), jnp.float32)],
        ),
        compiler_params=pltpu.CompilerParams(
            dimension_semantics=("parallel", "arbitrary"),
            vmem_limit_bytes=32 << 20),
    )(adj_bf16, inv_deg, x, x, w_stacked, bias)


# ---------------------------------------------------------------------------
# Fully fused conv1 + ReLU + conv2 kernel (small-graph path, everything in VMEM)
# ---------------------------------------------------------------------------
def _sage_fused_kernel(a_ref, invd_ref, x_ref, w1_ref, b1_ref, w2_ref, b2_ref,
                       o_ref):
    a = a_ref[...].astype(jnp.float32)
    invd = invd_ref[...]
    x = x_ref[...]

    hn1 = jnp.dot(a, x, preferred_element_type=jnp.float32) * invd
    h = jnp.dot(jnp.concatenate([x, hn1], axis=1), w1_ref[...],
                preferred_element_type=jnp.float32) + b1_ref[...]
    h = jnp.maximum(h, 0.0)

    hn2 = jnp.dot(a, h, preferred_element_type=jnp.float32) * invd
    out = jnp.dot(jnp.concatenate([h, hn2], axis=1), w2_ref[...],
                  preferred_element_type=jnp.float32) + b2_ref[...]
    o_ref[...] = out.astype(o_ref.dtype)


def _sage_fused(adj_bf16, inv_deg, x, w1, b1, w2, b2):
    n, f_in = x.shape
    f_hid = w1.shape[1]
    f_out = w2.shape[1]
    full = lambda shape: pl.BlockSpec(shape, lambda: (0, 0))
    return pl.pallas_call(
        _sage_fused_kernel,
        out_shape=jax.ShapeDtypeStruct((n, f_out), jnp.float32),
        in_specs=[
            full((n, n)),
            full((n, 1)),
            full((n, f_in)),
            full((2 * f_in, f_hid)),
            full((1, f_hid)),
            full((2 * f_hid, f_out)),
            full((1, f_out)),
        ],
        out_specs=full((n, f_out)),
    )(adj_bf16, inv_deg, x, w1, b1, w2, b2)


# ---------------------------------------------------------------------------
# Wrapper: padding, dtype narrowing, tile selection, path selection
# ---------------------------------------------------------------------------
def _round_up(v, m):
    return (v + m - 1) // m * m


def _tile_candidates(n_pad, cap):
    cands = [c for c in range(128, min(n_pad, cap) + 1, 128) if n_pad % c == 0]
    return sorted(cands) if cands else [n_pad]


def _choose_tiles(n_pad, f_in, f_out, *, cap=1024, budget=16 << 20):
    """Largest (tm, tk) divisors of n_pad whose double-buffered working set
    fits the VMEM budget."""
    def bytes_for(tm, tk):
        return (2 * tm * tk * 2            # adjacency tile (bf16, x2 buffers)
                + 2 * tk * f_in * 4        # source features
                + 2 * tm * f_in * 4        # dest features
                + 2 * tm * 128 * 4         # inv-degree column (padded layout)
                + 2 * 2 * f_in * f_out * 4 # stacked weights
                + 2 * 8 * f_out * 4        # bias
                + 2 * tm * f_out * 4       # output tile
                + tm * f_in * 4)           # scratch accumulator
    cands = _tile_candidates(n_pad, cap)
    best = (cands[0], cands[0])
    for tm in cands:
        for tk in cands:
            if bytes_for(tm, tk) <= budget:
                bm, bk = best
                if tm * tk > bm * bk or (tm * tk == bm * bk and tk > bk):
                    best = (tm, tk)
    return best


def sage_forward(adj, x, params, *, fuse_small=True, max_tile=1024):
    """Full SAGE forward: conv1 -> ReLU -> conv2.

    adj: [N, N] binary adjacency, adj[i, j] = 1 iff edge j -> i.
    x  : [N, in_feats] node features.
    """
    n = adj.shape[0]
    in_f = x.shape[1]
    hid_f = params["w_self1"].shape[1]
    out_f = params["w_self2"].shape[1]

    # Pad nodes and feature dims up to multiples of 128 (lane-dense stores,
    # full MXU columns).  Padded rows/cols are zero and sliced off at the end.
    n_pad = _round_up(max(n, 8), 128)
    fp_in = _round_up(in_f, 128)
    fp_hid = _round_up(hid_f, 128)
    fp_out = _round_up(out_f, 128)

    # Adjacency stays exact 0/1 -> bf16 is exact; halves HBM traffic of the
    # dominant N^2 operand (it is read by both layers).
    adj_p = jnp.pad(adj.astype(jnp.bfloat16),
                    ((0, n_pad - n), (0, n_pad - n)))
    # Degree normalization is a per-row scale applied inside the kernel.
    deg = jnp.sum(adj_p.astype(jnp.float32), axis=1, keepdims=True)
    inv_deg = (1.0 / jnp.maximum(deg, 1.0)).astype(jnp.float32)

    x_p = jnp.pad(x.astype(jnp.float32),
                  ((0, n_pad - n), (0, fp_in - in_f)))

    def pad_w(w, fi, fo):
        return jnp.pad(w.astype(jnp.float32),
                       ((0, fi - w.shape[0]), (0, fo - w.shape[1])))

    # Stack [W_self; W_neigh] so each layer's two small matmuls become one
    # MXU pass with a 2x wider contraction dim.
    w1 = jnp.concatenate([pad_w(params["w_self1"], fp_in, fp_hid),
                          pad_w(params["w_neigh1"], fp_in, fp_hid)], axis=0)
    b1 = jnp.pad(params["b1"].astype(jnp.float32),
                 ((0, 0), (0, fp_hid - hid_f)))
    w2 = jnp.concatenate([pad_w(params["w_self2"], fp_hid, fp_out),
                          pad_w(params["w_neigh2"], fp_hid, fp_out)], axis=0)
    b2 = jnp.pad(params["b2"].astype(jnp.float32),
                 ((0, 0), (0, fp_out - out_f)))

    # Static (shape-only) decision: tiny graphs take the fully fused kernel.
    fused_bytes = (n_pad * n_pad * 2
                   + n_pad * (fp_in + fp_hid + fp_out) * 4
                   + 2 * fp_in * fp_hid * 4 + 2 * fp_hid * fp_out * 4
                   + n_pad * 4)
    if fuse_small and fused_bytes <= (4 << 20):
        out_p = _sage_fused(adj_p, inv_deg, x_p, w1, b1, w2, b2)
        return out_p[:n, :out_f]

    # Tiled, pipelined path.  Largest tiles that fit the VMEM budget (keeps
    # per-grid-step overhead amortized while staying within v7x's 64 MiB VMEM).
    f_wide = max(fp_in, fp_hid)
    f_owide = max(fp_hid, fp_out)
    tm, tk = _choose_tiles(n_pad, f_wide, f_owide, cap=max_tile)

    h = _sage_layer_tiled(adj_p, inv_deg, x_p, w1, b1,
                          apply_relu=True, tm=tm, tk=tk)
    out_p = _sage_layer_tiled(adj_p, inv_deg, h, w2, b2,
                              apply_relu=False, tm=tm, tk=tk)
    return out_p[:n, :out_f]


def init_params(key, in_feats, hid_feats, out_feats):
    """Deterministic synthetic parameters (shapes match dglnn.SAGEConv linears)."""
    ks = jax.random.split(key, 6)

    def lin(k, fan_in, fan_out):
        bound = 1.0 / jnp.sqrt(fan_in)
        return jax.random.uniform(k, (fan_in, fan_out), jnp.float32, -bound, bound)

    return {
        "w_self1": lin(ks[0], in_feats, hid_feats),
        "w_neigh1": lin(ks[1], in_feats, hid_feats),
        "b1": jnp.zeros((1, hid_feats), jnp.float32),
        "w_self2": lin(ks[2], hid_feats, out_feats),
        "w_neigh2": lin(ks[3], hid_feats, out_feats),
        "b2": jnp.zeros((1, out_feats), jnp.float32),
    }


if __name__ == "__main__":
    key = jax.random.PRNGKey(0)
    k_adj, k_x, k_p, k_adj2, k_x2 = jax.random.split(key, 5)

    def reference(adj, x, p):
        deg = jnp.sum(adj, axis=1, keepdims=True)
        a_norm = adj / jnp.maximum(deg, 1.0)
        h = jnp.maximum(
            x @ p["w_self1"] + (a_norm @ x) @ p["w_neigh1"] + p["b1"], 0.0)
        return h @ p["w_self2"] + (a_norm @ h) @ p["w_neigh2"] + p["b2"]

    # ---- Test 1: tiny graph (exercises the fused single-call path) ----
    N1, IN_F, HID_F, OUT_F = 16, 32, 32, 16
    adj1 = (jax.random.uniform(k_adj, (N1, N1)) < 0.3).astype(jnp.float32)
    x1 = jax.random.normal(k_x, (N1, IN_F), jnp.float32)
    params = init_params(k_p, IN_F, HID_F, OUT_F)

    out1 = jax.jit(sage_forward)(adj1, x1, params)
    jax.block_until_ready(out1)
    ref1 = reference(adj1, x1, params)
    assert out1.shape == (N1, OUT_F)
    assert jnp.allclose(out1, ref1, atol=1e-3, rtol=1e-3), \
        float(jnp.max(jnp.abs(out1 - ref1)))

    # ---- Test 2: larger graph, tiled path with the auto-selected (big) tiles ----
    N2 = 300
    adj2 = (jax.random.uniform(k_adj2, (N2, N2)) < 0.05).astype(jnp.float32)
    x2 = jax.random.normal(k_x2, (N2, IN_F), jnp.float32)

    out2 = jax.jit(partial(sage_forward, fuse_small=False))(adj2, x2, params)
    jax.block_until_ready(out2)
    ref2 = reference(adj2, x2, params)
    assert out2.shape == (N2, OUT_F)
    assert jnp.allclose(out2, ref2, atol=1e-3, rtol=1e-3), \
        float(jnp.max(jnp.abs(out2 - ref2)))

    # ---- Test 3: same graph, tiles capped at 128 so the K-accumulation loop
    #      (pl.when init at k==0 / finalize at k==last) is exercised, grid 3x3 ----
    out3 = jax.jit(partial(sage_forward, fuse_small=False, max_tile=128))(
        adj2, x2, params)
    jax.block_until_ready(out3)
    assert out3.shape == (N2, OUT_F)
    assert jnp.allclose(out3, ref2, atol=1e-3, rtol=1e-3), \
        float(jnp.max(jnp.abs(out3 - ref2)))

    print("KERNEL_OK")
</pallas_src>

<mosaic_0001>
module attributes {stable_mosaic.version = 11 : i64} {
  func.func @_sage_fused_kernel(%arg0: memref<128x128xbf16, #tpu.memory_space<vmem>>, %arg1: memref<128x1xf32, #tpu.memory_space<vmem>>, %arg2: memref<128x128xf32, #tpu.memory_space<vmem>>, %arg3: memref<256x128xf32, #tpu.memory_space<vmem>>, %arg4: memref<1x128xf32, #tpu.memory_space<vmem>>, %arg5: memref<256x128xf32, #tpu.memory_space<vmem>>, %arg6: memref<1x128xf32, #tpu.memory_space<vmem>>, %arg7: memref<128x128xf32, #tpu.memory_space<vmem>>) attributes {dimension_semantics = [], scalar_prefetch = 0 : i64, scratch_operands = 0 : i64, tpu.core_type = #tpu.core_type<tc>} {
    %c0 = arith.constant 0 : index
    %c0_0 = arith.constant 0 : index
    %0 = vector.load %arg0[%c0, %c0_0] : memref<128x128xbf16, #tpu.memory_space<vmem>>, vector<128x128xbf16>
    %1 = arith.extf %0 : vector<128x128xbf16> to vector<128x128xf32>
    %c0_1 = arith.constant 0 : index
    %c0_2 = arith.constant 0 : index
    %2 = vector.load %arg1[%c0_1, %c0_2] : memref<128x1xf32, #tpu.memory_space<vmem>>, vector<128x1xf32>
    %c0_3 = arith.constant 0 : index
    %c0_4 = arith.constant 0 : index
    %3 = vector.load %arg2[%c0_3, %c0_4] : memref<128x128xf32, #tpu.memory_space<vmem>>, vector<128x128xf32>
    %cst = arith.constant dense<0.000000e+00> : vector<128x128xf32>
    %4 = tpu.matmul %1, %3, %cst {dimension_numbers = #tpu.dot_dimension_numbers<[1], [0], [0], [1], [0, 0, 1, 1], [], []>} : vector<128x128xf32>, vector<128x128xf32>, vector<128x128xf32> -> vector<128x128xf32>
    %5 = vector.broadcast %2 : vector<128x1xf32> to vector<128x128xf32>
    %6 = arith.mulf %4, %5 : vector<128x128xf32>
    %7 = tpu.concatenate %3, %6 in 1 : vector<128x128xf32>, vector<128x128xf32> -> vector<128x256xf32>
    %c0_5 = arith.constant 0 : index
    %c0_6 = arith.constant 0 : index
    %8 = vector.load %arg3[%c0_5, %c0_6] : memref<256x128xf32, #tpu.memory_space<vmem>>, vector<256x128xf32>
    %cst_7 = arith.constant dense<0.000000e+00> : vector<128x128xf32>
    %9 = tpu.matmul %7, %8, %cst_7 {dimension_numbers = #tpu.dot_dimension_numbers<[1], [0], [0], [1], [0, 0, 1, 1], [], []>} : vector<128x256xf32>, vector<256x128xf32>, vector<128x128xf32> -> vector<128x128xf32>
    %c0_8 = arith.constant 0 : index
    %c0_9 = arith.constant 0 : index
    %10 = vector.load %arg4[%c0_8, %c0_9] : memref<1x128xf32, #tpu.memory_space<vmem>>, vector<1x128xf32>
    %11 = vector.broadcast %10 : vector<1x128xf32> to vector<128x128xf32>
    %12 = arith.addf %9, %11 : vector<128x128xf32>
    %cst_10 = arith.constant 0.000000e+00 : f32
    %13 = vector.broadcast %cst_10 : f32 to vector<128x128xf32>
    %14 = arith.maximumf %12, %13 : vector<128x128xf32>
    %cst_11 = arith.constant dense<0.000000e+00> : vector<128x128xf32>
    %15 = tpu.matmul %1, %14, %cst_11 {dimension_numbers = #tpu.dot_dimension_numbers<[1], [0], [0], [1], [0, 0, 1, 1], [], []>} : vector<128x128xf32>, vector<128x128xf32>, vector<128x128xf32> -> vector<128x128xf32>
    %16 = vector.broadcast %2 : vector<128x1xf32> to vector<128x128xf32>
    %17 = arith.mulf %15, %16 : vector<128x128xf32>
    %18 = tpu.concatenate %14, %17 in 1 : vector<128x128xf32>, vector<128x128xf32> -> vector<128x256xf32>
    %c0_12 = arith.constant 0 : index
    %c0_13 = arith.constant 0 : index
    %19 = vector.load %arg5[%c0_12, %c0_13] : memref<256x128xf32, #tpu.memory_space<vmem>>, vector<256x128xf32>
    %cst_14 = arith.constant dense<0.000000e+00> : vector<128x128xf32>
    %20 = tpu.matmul %18, %19, %cst_14 {dimension_numbers = #tpu.dot_dimension_numbers<[1], [0], [0], [1], [0, 0, 1, 1], [], []>} : vector<128x256xf32>, vector<256x128xf32>, vector<128x128xf32> -> vector<128x128xf32>
    %c0_15 = arith.constant 0 : index
    %c0_16 = arith.constant 0 : index
    %21 = vector.load %arg6[%c0_15, %c0_16] : memref<1x128xf32, #tpu.memory_space<vmem>>, vector<1x128xf32>
    %22 = vector.broadcast %21 : vector<1x128xf32> to vector<128x128xf32>
    %23 = arith.addf %20, %22 : vector<128x128xf32>
    %c0_17 = arith.constant 0 : index
    %c0_18 = arith.constant 0 : index
    %24 = vector.load %arg7[%c0_17, %c0_18] : memref<128x128xf32, #tpu.memory_space<vmem>>, vector<128x128xf32>
    tpu.vector_store %arg7[%c0_17, %c0_18], %23 {strides = array<i32>} : memref<128x128xf32, #tpu.memory_space<vmem>>, vector<128x128xf32>,
    return
  }
}

</mosaic_0001>

<bundles_post_ra>
// kernel: sage_forward.1
= control target key start
LH: loop header
LB: loop body
LE: loop exit
PB: predicated region body
PF: predicated region fallthrough
CT: control target
= control target key end

     0   :  { %v1276_v2 = vmov 0   ;;  %s2032_s2 = inlined_call_operand.vmem [shape: f32[128,128], index: 2, kind: input, shape index: {}]   ;;  %s2033_s0 = inlined_call_operand.vmem [shape: bf16[128,128], index: 0, kind: input, shape index: {}]   ;;  %s2034_s1 = inlined_call_operand.vmem [shape: f32[128,1], index: 1, kind: input, shape index: {}]   ;;  %s2035_s3 = inlined_call_operand.vmem [shape: f32[256,128], index: 3, kind: input, shape index: {}]   ;;  %s2036_s4 = inlined_call_operand.vmem [shape: f32[1,128], index: 4, kind: input, shape index: {}]   ;;  %s2037_s5 = inlined_call_operand.vmem [shape: f32[256,128], index: 5, kind: input, shape index: {}]   ;;  %s2038_s6 = inlined_call_operand.vmem [shape: f32[1,128], index: 6, kind: input, shape index: {}]   ;;  %s2039_s7 = inlined_call_operand.vmem [shape: f32[128,128], index: 7, kind: output, shape index: {}]  }
   0x1   :  { %v1320_v0 = vld [vmem:[%s2032_s2 + $0x78] sm:$0xff]  ;;  %v1325_v1 = vld [vmem:[%s2032_s2 + $0x70] sm:$0xff]  ;;  %1274 = vset.pattern.permute.xlu0 %v1276_v2  ;;  %1275 = vset.pattern.permute.xlu1 %v1276_v2  ;;  %v1332_v3 = vld [vmem:[%s2032_s2 + $0x68] sm:$0xff] }
   0x2   :  { %1161 = vmatprep.subr.mxu1 %v1320_v0  ;;  %v1339_v4 = vld [vmem:[%s2032_s2 + $0x60] sm:$0xff]  ;;  %v1351_v6 = vld [vmem:[%s2032_s2 + $0x58] sm:$0xff]  ;;  %v1359_v8 = vld [vmem:[%s2032_s2 + $0x50] sm:$0xff] }
   0x3   :  { %1162 = vmatpush3.msra.mxu1 %v1320_v0  ;;  %v1345_v5 = vld [vmem:[%s2033_s0] sm:$0xff]   ;;  %v60_v10 = vld [vmem:[%s2034_s1 + $0x10] sm:$0xff]  ;;  %v1372_v11 = vld [vmem:[%s2032_s2 + $0x48] sm:$0xff] }
   0x4   :  { %1163 = vmatprep.subr.mxu1 %v1325_v1  ;;  %v900_v7 = vunpack.c.l.bf16 %v1345_v5  ;;  %v58_v9 = vld [vmem:[%s2034_s1] sm:$0xff]  ;;  %v59_v12 = vld [vmem:[%s2034_s1 + $0x8] sm:$0xff]  ;;  %247 = vperm.xlu1 %1275, %v60_v10   ;;  %v61_v13 = vld [vmem:[%s2034_s1 + $0x18] sm:$0xff]  ;;  %v2054_v32 = vunpack.c.h.bf16 %v1345_v5 }
   0x5   :  { %1164 = vmatpush3.msra.mxu1 %v1325_v1  ;;  %237 = vperm.xlu0 %1274, %v58_v9   ;;  %v1385_v14 = vld [vmem:[%s2032_s2 + $0x40] sm:$0xff]  ;;  %v1392_v15 = vld [vmem:[%s2032_s2 + $0x38] sm:$0xff]  ;;  %v63_v17 = vld [vmem:[%s2034_s1 + $0x28] sm:$0xff] }
   0x6   :  { %1165 = vmatprep.subr.mxu1 %v1332_v3  ;;  %1193 = vmatprep.mubr.f32.mxu1 %v900_v7  ;;  %v62_v16 = vld [vmem:[%s2034_s1 + $0x20] sm:$0xff]  ;;  %v1405_v18 = vld [vmem:[%s2032_s2 + $0x30] sm:$0xff]  ;;  %v1412_v19 = vld [vmem:[%s2032_s2 + $0x28] sm:$0xff] }
   0x7   :  { %1166 = vmatpush3.msra.mxu1 %v1332_v3  ;;  %1249 = vmatprep.mubr.f32.mxu0 %v900_v7  ;;  %v64_v20 = vld [vmem:[%s2034_s1 + $0x30] sm:$0xff]  ;;  %v65_v21 = vld [vmem:[%s2034_s1 + $0x38] sm:$0xff]  ;;  %v1425_v22 = vld [vmem:[%s2032_s2 + $0x20] sm:$0xff] }
   0x8   :  { %1167 = vmatprep.subr.mxu1 %v1339_v4  ;;  %252 = vperm.xlu1 %1275, %v61_v13   ;;  %v1432_v23 = vld [vmem:[%s2032_s2 + $0x18] sm:$0xff]  ;;  %v66_v24 = vld [vmem:[%s2034_s1 + $0x40] sm:$0xff]  ;;  %v67_v25 = vld [vmem:[%s2034_s1 + $0x48] sm:$0xff] }
   0x9   :  { %1168 = vmatpush3.msra.mxu1 %v1339_v4  ;;  %242 = vperm.xlu0 %1274, %v59_v12   ;;  %v1445_v26 = vld [vmem:[%s2032_s2 + $0x10] sm:$0xff]  ;;  %v1452_v27 = vld [vmem:[%s2032_s2 + $0x8] sm:$0xff]  ;;  %v69_v30 = vld [vmem:[%s2034_s1 + $0x58] sm:$0xff] }
   0xa   :  { %1169 = vmatprep.subr.mxu1 %v1351_v6  ;;  %v68_v28 = vld [vmem:[%s2034_s1 + $0x50] sm:$0xff]  ;;  %v1461_v29 = vld [vmem:[%s2033_s0 + $0x8] sm:$0xff]   ;;  %v1470_v31 = vld [vmem:[%s2032_s2] sm:$0xff] }
   0xb   :  { %1170 = vmatpush3.msra.mxu1 %v1351_v6  ;;  %v2053_v33 = vunpack.c.l.bf16 %v1461_v29  ;;  %v70_v34 = vld [vmem:[%s2034_s1 + $0x60] sm:$0xff]  ;;  %v1483_v35 = vld [vmem:[%s2033_s0 + $0x10] sm:$0xff]   ;;  %v71_v36 = vld [vmem:[%s2034_s1 + $0x68] sm:$0xff]  ;;  %v2052_v38 = vunpack.c.h.bf16 %v1461_v29 }
   0xc   :  { %1171 = vmatprep.subr.mxu1 %v1359_v8  ;;  %262 = vperm.xlu1 %1275, %v63_v17   ;;  %v362_v37 = vld [vmem:[%s2035_s3 + $0xf8] sm:$0xff]  ;;  %v2051_v40 = vunpack.c.l.bf16 %v1483_v35  ;;  %v72_v41 = vld [vmem:[%s2034_s1 + $0x70] sm:$0xff]  ;;  %v2050_v45 = vunpack.c.h.bf16 %v1483_v35  ;;  %v360_v48 = vld [vmem:[%s2035_s3 + $0xe8] sm:$0xff] }
   0xd   :  { %1172 = vmatpush3.msra.mxu1 %v1359_v8  ;;  %257 = vperm.xlu0 %1274, %v62_v16   ;;  %v346_v39 = vld [vmem:[%s2035_s3 + $0x78] sm:$0xff]  ;;  %v361_v44 = vld [vmem:[%s2035_s3 + $0xf0] sm:$0xff]  ;;  %v1530_v49 = vld [vmem:[%s2033_s0 + $0x20] sm:$0xff]  }
   0xe   :  { %1173 = vmatprep.subr.mxu1 %v1372_v11  ;;  %v1507_v42 = vld [vmem:[%s2033_s0 + $0x18] sm:$0xff]   ;;  %v345_v46 = vld [vmem:[%s2035_s3 + $0x70] sm:$0xff]  ;;  %v344_v50 = vld [vmem:[%s2035_s3 + $0x68] sm:$0xff]  ;;  %v2047_v54 = vunpack.c.l.bf16 %v1530_v49  ;;  %v2046_v59 = vunpack.c.h.bf16 %v1530_v49 }
   0xf   :  { %1174 = vmatpush3.msra.mxu1 %v1372_v11  ;;  %v73_v43 = vld [vmem:[%s2034_s1 + $0x78] sm:$0xff]  ;;  %v2049_v47 = vunpack.c.l.bf16 %v1507_v42  ;;  %v359_v51 = vld [vmem:[%s2035_s3 + $0xe0] sm:$0xff]  ;;  %v2048_v52 = vunpack.c.h.bf16 %v1507_v42  ;;  %v1553_v56 = vld [vmem:[%s2033_s0 + $0x28] sm:$0xff]  }
  0x10   :  { %1175 = vmatprep.subr.mxu1 %v1385_v14  ;;  %272 = vperm.xlu1 %1275, %v65_v21   ;;  %v343_v53 = vld [vmem:[%s2035_s3 + $0x60] sm:$0xff]  ;;  %v358_v55 = vld [vmem:[%s2035_s3 + $0xd8] sm:$0xff]  ;;  %v357_v58 = vld [vmem:[%s2035_s3 + $0xd0] sm:$0xff]  ;;  %v2045_v61 = vunpack.c.l.bf16 %v1553_v56  ;;  %v2044_v9 = vunpack.c.h.bf16 %v1553_v56 }
  0x11   :  { %1176 = vmatpush3.msra.mxu1 %v1385_v14  ;;  %267 = vperm.xlu0 %1274, %v64_v20   ;;  %v342_v57 = vld [vmem:[%s2035_s3 + $0x58] sm:$0xff]  ;;  %v341_v60 = vld [vmem:[%s2035_s3 + $0x50] sm:$0xff]  ;;  %v356_v62 = vld [vmem:[%s2035_s3 + $0xc8] sm:$0xff] }
  0x12   :  { %1177 = vmatprep.subr.mxu1 %v1392_v15  ;;  %v1576_v63 = vld [vmem:[%s2033_s0 + $0x30] sm:$0xff]   ;;  %v340_v2 = vld [vmem:[%s2035_s3 + $0x48] sm:$0xff]  ;;  %v355_v7 = vld [vmem:[%s2035_s3 + $0xc0] sm:$0xff] }
  0x13   :  { %1178 = vmatpush3.msra.mxu1 %v1392_v15  ;;  %v339_v10 = vld [vmem:[%s2035_s3 + $0x40] sm:$0xff]  ;;  %v2043_v12 = vunpack.c.l.bf16 %v1576_v63  ;;  %v354_v13 = vld [vmem:[%s2035_s3 + $0xb8] sm:$0xff]  ;;  %v353_v20 = vld [vmem:[%s2035_s3 + $0xb0] sm:$0xff]  ;;  %v2042_v21 = vunpack.c.h.bf16 %v1576_v63 }
  0x14   :  { %1179 = vmatprep.subr.mxu1 %v1405_v18  ;;  %282 = vperm.xlu1 %1275, %v67_v25   ;;  %v1599_v16 = vld [vmem:[%s2033_s0 + $0x38] sm:$0xff]  }
  0x15   :  { %1180 = vmatpush3.msra.mxu1 %v1405_v18  ;;  %277 = vperm.xlu0 %1274, %v66_v24   ;;  %v338_v17 = vld [vmem:[%s2035_s3 + $0x38] sm:$0xff]  ;;  %v337_v24 = vld [vmem:[%s2035_s3 + $0x30] sm:$0xff]  ;;  %v2041_v25 = vunpack.c.l.bf16 %v1599_v16 }
  0x16   :  { %1181 = vmatprep.subr.mxu1 %v1412_v19 }
  0x17   :  { %1182 = vmatpush3.msra.mxu1 %v1412_v19 }
  0x18   :  { %1183 = vmatprep.subr.mxu1 %v1425_v22  ;;  %292 = vperm.xlu1 %1275, %v69_v30   ;;  %v336_v30 = vld [vmem:[%s2035_s3 + $0x28] sm:$0xff] }
  0x19   :  { %1184 = vmatpush3.msra.mxu1 %v1425_v22  ;;  %287 = vperm.xlu0 %1274, %v68_v28   ;;  %v352_v28 = vld [vmem:[%s2035_s3 + $0xa8] sm:$0xff] }
  0x1a   :  { %1185 = vmatprep.subr.mxu1 %v1432_v23 }
  0x1b   :  { %1186 = vmatpush3.msra.mxu1 %v1432_v23 }
  0x1c   :  { %1187 = vmatprep.subr.mxu1 %v1445_v26  ;;  %302 = vperm.xlu1 %1275, %v71_v36   ;;  %v2040_v36 = vunpack.c.h.bf16 %v1599_v16 }
  0x1d   :  { %1188 = vmatpush3.msra.mxu1 %v1445_v26  ;;  %297 = vperm.xlu0 %1274, %v70_v34   ;;  %v351_v34 = vld [vmem:[%s2035_s3 + $0xa0] sm:$0xff] }
  0x1e   :  { %1189 = vmatprep.subr.mxu1 %v1452_v27 }
  0x1f   :  { %1190 = vmatpush3.msra.mxu1 %v1452_v27 }
  0x20   :  { %1191 = vmatprep.subr.mxu1 %v1470_v31  ;;  %312 = vperm.xlu1 %1275, %v73_v43   ;;  %v349_v43 = vld [vmem:[%s2035_s3 + $0x90] sm:$0xff] }
  0x21   :  { %1192 = vmatpush3.msra.mxu1 %v1470_v31  ;;  %307 = vperm.xlu0 %1274, %v72_v41   ;;  %v334_v41 = vld [vmem:[%s2035_s3 + $0x18] sm:$0xff] }
  0x22   :  { %1194 = vmatmul.mubr.f32.vlgmr.msra.gmra.mxu1 %v2054_v32  ;;  %969 = vmatprep.subr.mxu1 %v362_v37  ;;  %v335_v37 = vld [vmem:[%s2035_s3 + $0x20] sm:$0xff] }
  0x23   :  { %1196 = vmatprep.mubr.f32.mxu1 %v2053_v33  ;;  %970 = vmatpush3.msra.mxu1 %v346_v39  ;;  %v350_v39 = vld [vmem:[%s2035_s3 + $0x98] sm:$0xff] }
  0x24   :  { %971 = vmatprep.subr.mxu1 %v361_v44  ;;  %v333_v44 = vld [vmem:[%s2035_s3 + $0x10] sm:$0xff] }
  0x25   :  { %972 = vmatpush3.msra.mxu1 %v345_v46  ;;  %v348_v46 = vld [vmem:[%s2035_s3 + $0x88] sm:$0xff] }
  0x26   :  { %1197 = vmatmul.mubr.f32.gmra.mxu1 %v2052_v38  ;;  %973 = vmatprep.subr.mxu1 %v360_v48  ;;  %v332_v48 = vld [vmem:[%s2035_s3 + $0x8] sm:$0xff] }
  0x27   :  { %1199 = vmatprep.mubr.f32.mxu1 %v2051_v40  ;;  %974 = vmatpush3.msra.mxu1 %v344_v50  ;;  %v347_v50 = vld [vmem:[%s2035_s3 + $0x80] sm:$0xff] }
  0x28   :  { %975 = vmatprep.subr.mxu1 %v359_v51  ;;  %v331_v51 = vld [vmem:[%s2035_s3] sm:$0xff] }
  0x29   :  { %976 = vmatpush3.msra.mxu1 %v343_v53 }
  0x2a   :  { %1200 = vmatmul.mubr.f32.gmra.mxu1 %v2050_v45  ;;  %977 = vmatprep.subr.mxu1 %v358_v55 }
  0x2b   :  { %1202 = vmatprep.mubr.f32.mxu1 %v2049_v47  ;;  %978 = vmatpush3.msra.mxu1 %v342_v57 }
  0x2c   :  { %979 = vmatprep.subr.mxu1 %v357_v58 }
  0x2d   :  { %980 = vmatpush3.msra.mxu1 %v341_v60 }
  0x2e   :  { %1203 = vmatmul.mubr.f32.gmra.mxu1 %v2048_v52  ;;  %981 = vmatprep.subr.mxu1 %v356_v62 }
  0x2f   :  { %1205 = vmatprep.mubr.f32.mxu1 %v2047_v54  ;;  %982 = vmatpush3.msra.mxu1 %v340_v2 }
  0x30   :  { %983 = vmatprep.subr.mxu1 %v355_v7 }
  0x31   :  { %984 = vmatpush3.msra.mxu1 %v339_v10 }
  0x32   :  { %1206 = vmatmul.mubr.f32.gmra.mxu1 %v2046_v59  ;;  %985 = vmatprep.subr.mxu1 %v354_v13 }
  0x33   :  { %1208 = vmatprep.mubr.f32.mxu1 %v2045_v61  ;;  %986 = vmatpush3.msra.mxu1 %v338_v17  ;;  %v896_v61 = vld [vmem:[%s2036_s4] ss:$0 sm:$0xff] }
  0x34   :  { %987 = vmatprep.subr.mxu1 %v353_v20 }
  0x35   :  { %988 = vmatpush3.msra.mxu1 %v337_v24 }
  0x36   :  { %1209 = vmatmul.mubr.f32.gmra.mxu1 %v2044_v9  ;;  %989 = vmatprep.subr.mxu1 %v352_v28 }
  0x37   :  { %1211 = vmatprep.mubr.f32.mxu1 %v2043_v12  ;;  %990 = vmatpush3.msra.mxu1 %v336_v30 }
  0x38   :  { %991 = vmatprep.subr.mxu1 %v351_v34 }
  0x39   :  { %992 = vmatpush3.msra.mxu1 %v335_v37 }
  0x3a   :  { %1212 = vmatmul.mubr.f32.gmra.mxu1 %v2042_v21  ;;  %993 = vmatprep.subr.mxu1 %v350_v39 }
  0x3b   :  { %1214 = vmatprep.mubr.f32.mxu1 %v2041_v25  ;;  %994 = vmatpush3.msra.mxu1 %v334_v41 }
  0x3c   :  { %995 = vmatprep.subr.mxu1 %v349_v43 }
  0x3d   :  { %996 = vmatpush3.msra.mxu1 %v333_v44 }
  0x3e   :  { %1215 = vmatmul.mubr.f32.gmra.mxu1 %v2040_v36  ;;  %997 = vmatprep.subr.mxu1 %v348_v46 }
  0x3f   :  { %998 = vmatpush3.msra.mxu1 %v332_v48 }
  0x40   :  { %999 = vmatprep.subr.mxu1 %v347_v50 }
  0x41   :  { %1000 = vmatpush3.msra.mxu1 %v331_v51 }
  0x7f   :  { %v1665_v7 = vpop.permute.xlu1 %247 }
  0x80   :  { %v1659_v53 = vpop.permute.xlu0 %237 }
  0x83   :  { %v1670_v20 = vpop.permute.xlu1 %252 }
  0x84   :  { %v1662_v60 = vpop.permute.xlu0 %242 }
  0x87   :  { %v1678_v37 = vpop.permute.xlu1 %262 }
  0x88   :  { %v1674_v30 = vpop.permute.xlu0 %257 }
  0x8b   :  { %v1686_v44 = vpop.permute.xlu1 %272 }
  0x8c   :  { %v1682_v41 = vpop.permute.xlu0 %267 }
  0x8f   :  { %v1694_v51 = vpop.permute.xlu1 %282 }
  0x90   :  { %v1690_v48 = vpop.permute.xlu0 %277 }
  0xe2   :  { %v1195_v55 = vpop.f32.mrf.mxu1 }
  0xe3   :  { %v316_v2 = vmul.f32 %v1195_v55, %v1662_v60 }
  0xe4   :  { %v156_v57 = vpop.f32.mrf.mxu1 }
  0xe5   :  { %v315_v58 = vmul.f32 %v1659_v53, %v156_v57  ;;  %v1698_v57 = vpop.permute.xlu0 %287 }
  0xe6   :  { %v1198_v62 = vpop.f32.mrf.mxu1 }
  0xe7   :  { %434 = vmatprep.mubr.f32.mxu1 %v315_v58  ;;  %v318_v24 = vmul.f32 %v1198_v62, %v1670_v20  ;;  %v1702_v62 = vpop.permute.xlu1 %292 }
  0xe8   :  { %v166_v10 = vpop.f32.mrf.mxu1  ;;  %435 = vmatmul.mubr.f32.vlgmr.msra.gmra.mxu1 %v1470_v31 }
  0xe9   :  { %v317_v13 = vmul.f32 %v1665_v7, %v166_v10  ;;  %439 = vmatprep.mubr.f32.mxu1 %v316_v2  ;;  %v1706_v10 = vpop.permute.xlu0 %297 }
  0xea   :  { %v1201_v17 = vpop.f32.mrf.mxu1 }
  0xec   :  { %440 = vmatmul.mubr.f32.gmra.mxu1 %v1452_v27  ;;  %v176_v28 = vpop.f32.mrf.mxu1  ;;  %v320_v27 = vmul.f32 %v1201_v17, %v1678_v37  ;;  %v1710_v17 = vpop.permute.xlu1 %302 }
  0xed   :  { %444 = vmatprep.mubr.f32.mxu1 %v317_v13  ;;  %v319_v34 = vmul.f32 %v1674_v30, %v176_v28  ;;  %v1714_v28 = vpop.permute.xlu0 %307 }
  0xee   :  { %v1204_v31 = vpop.f32.mrf.mxu1 }
  0xf0   :  { %445 = vmatmul.mubr.f32.gmra.mxu1 %v1445_v26  ;;  %v186_v39 = vpop.f32.mrf.mxu1 }
  0xf1   :  { %449 = vmatprep.mubr.f32.mxu1 %v318_v24  ;;  %v321_v26 = vmul.f32 %v1682_v41, %v186_v39 }
  0xf2   :  { %v1207_v43 = vpop.f32.mrf.mxu1 }
  0xf4   :  { %450 = vmatmul.mubr.f32.gmra.mxu1 %v1432_v23  ;;  %v322_v23 = vmul.f32 %v1204_v31, %v1686_v44  ;;  %v196_v46 = vpop.f32.mrf.mxu1 }
  0xf5   :  { %454 = vmatprep.mubr.f32.mxu1 %v319_v34  ;;  %v1718_v34 = vpop.permute.xlu1 %312 }
  0xf6   :  { %v1210_v50 = vpop.f32.mrf.mxu1 }
  0xf8   :  { %455 = vmatmul.mubr.f32.gmra.mxu1 %v1425_v22  ;;  %v323_v22 = vmul.f32 %v1690_v48, %v196_v46  ;;  %v206_v55 = vpop.f32.mrf.mxu1 }
  0xf9   :  { %459 = vmatprep.mubr.f32.mxu1 %v320_v27 }
  0xfa   :  { %v1213_v58 = vpop.f32.mrf.mxu1 }
  0xfc   :  { %460 = vmatmul.mubr.f32.gmra.mxu1 %v1412_v19  ;;  %v324_v19 = vmul.f32 %v1207_v43, %v1694_v51  ;;  %v216_v2 = vpop.f32.mrf.mxu1 }
  0xfd   :  { %464 = vmatprep.mubr.f32.mxu1 %v321_v26 }
  0xfe   :  { %v1216_v13 = vpop.f32.mrf.mxu1 }
 0x100   :  { %465 = vmatmul.mubr.f32.gmra.mxu1 %v1405_v18  ;;  %v325_v18 = vmul.f32 %v1698_v57, %v206_v55  ;;  %v226_v24 = vpop.f32.mrf.mxu1 }
 0x101   :  { %469 = vmatprep.mubr.f32.mxu1 %v322_v23 }
 0x104   :  { %470 = vmatmul.mubr.f32.gmra.mxu1 %v1392_v15  ;;  %v326_v15 = vmul.f32 %v1210_v50, %v1702_v62 }
 0x105   :  { %474 = vmatprep.mubr.f32.mxu1 %v323_v22 }
 0x108   :  { %475 = vmatmul.mubr.f32.gmra.mxu1 %v1385_v14  ;;  %v327_v14 = vmul.f32 %v1706_v10, %v216_v2 }
 0x109   :  { %479 = vmatprep.mubr.f32.mxu1 %v324_v19 }
 0x10c   :  { %480 = vmatmul.mubr.f32.gmra.mxu1 %v1372_v11  ;;  %v328_v11 = vmul.f32 %v1213_v58, %v1710_v17 }
 0x10d   :  { %484 = vmatprep.mubr.f32.mxu1 %v325_v18 }
 0x110   :  { %485 = vmatmul.mubr.f32.gmra.mxu1 %v1359_v8  ;;  %v329_v8 = vmul.f32 %v1714_v28, %v226_v24 }
 0x111   :  { %489 = vmatprep.mubr.f32.mxu1 %v326_v15 }
 0x114   :  { %490 = vmatmul.mubr.f32.gmra.mxu1 %v1351_v6  ;;  %v330_v6 = vmul.f32 %v1216_v13, %v1718_v34 }
 0x115   :  { %494 = vmatprep.mubr.f32.mxu1 %v327_v14 }
 0x118   :  { %495 = vmatmul.mubr.f32.gmra.mxu1 %v1339_v4 }
 0x119   :  { %499 = vmatprep.mubr.f32.mxu1 %v328_v11 }
 0x11c   :  { %500 = vmatmul.mubr.f32.gmra.mxu1 %v1332_v3 }
 0x11d   :  { %504 = vmatprep.mubr.f32.mxu1 %v329_v8 }
 0x120   :  { %505 = vmatmul.mubr.f32.gmra.mxu1 %v1325_v1 }
 0x121   :  { %509 = vmatprep.mubr.f32.mxu1 %v330_v6 }
 0x124   :  { %510 = vmatmul.mubr.f32.gmra.mxu1 %v1320_v0 }
 0x1a8   :  { %v1001_v31 = vpop.f32.mrf.mxu1 }
 0x1aa   :  { %v1002_v27 = vpop.f32.mrf.mxu1 }
 0x1ab   :  { %v1723_v4 = vadd.f32 %v1002_v27, %v1001_v31 }
 0x1ac   :  { %v1004_v39 = vpop.f32.mrf.mxu1 }
 0x1ae   :  { %v1005_v26 = vpop.f32.mrf.mxu1 }
 0x1af   :  { %v1725_v43 = vadd.f32 %v1005_v26, %v1004_v39 }
 0x1b0   :  { %v1007_v23 = vpop.f32.mrf.mxu1 }
 0x1b2   :  { %v1008_v3 = vpop.f32.mrf.mxu1 }
 0x1b3   :  { %v1727_v46 = vadd.f32 %v1008_v3, %v1007_v23 }
 0x1b4   :  { %v1010_v22 = vpop.f32.mrf.mxu1 }
 0x1b6   :  { %v1011_v50 = vpop.f32.mrf.mxu1 }
 0x1b7   :  { %v1729_v19 = vadd.f32 %v1011_v50, %v1010_v22 }
 0x1b8   :  { %v1013_v1 = vpop.f32.mrf.mxu1 }
 0x1ba   :  { %v1014_v55 = vpop.f32.mrf.mxu1 }
 0x1bb   :  { %v1731_v18 = vadd.f32 %v1014_v55, %v1013_v1 }
 0x1bc   :  { %v1016_v0 = vpop.f32.mrf.mxu1 }
 0x1be   :  { %v1017_v58 = vpop.f32.mrf.mxu1 }
 0x1c0   :  { %v1019_v15 = vpop.f32.mrf.mxu1 }
 0x1c2   :  { %v1020_v2 = vpop.f32.mrf.mxu1 }
 0x1c4   :  { %v1022_v14 = vpop.f32.mrf.mxu1 }
 0x1c6   :  { %v1023_v13 = vpop.f32.mrf.mxu1 }
 0x1c8   :  { %v1025_v11 = vpop.f32.mrf.mxu1 }
 0x1ca   :  { %v1026_v24 = vpop.f32.mrf.mxu1 }
 0x1cc   :  { %v1028_v8 = vpop.f32.mrf.mxu1 }
 0x1ce   :  { %v1029_v6 = vpop.f32.mrf.mxu1 }
 0x1d0   :  { %v1031_v31 = vpop.f32.mrf.mxu1 }
 0x1d2   :  { %v1032_v27 = vpop.f32.mrf.mxu1 }
 0x1d3   :  { %v1033_v38 = vadd.f32 %v1032_v27, %v1031_v31  ;;  %v447_v31 = vadd.f32 %v1727_v46, %v896_v61 }
 0x1d4   :  { %v1034_v39 = vpop.f32.mrf.mxu1 }
 0x1d6   :  { %v1035_v26 = vpop.f32.mrf.mxu1 }
 0x1d7   :  { %v1036_v47 = vadd.f32 %v1035_v26, %v1034_v39  ;;  %v1791_v26 = vmax.f32 %v447_v31, 0.0  ;;  %v715_v31 = vld [vmem:[%s2037_s5 + $0xb8] sm:$0xff] }
 0x1d8   :  { %v1037_v23 = vpop.f32.mrf.mxu1 }
 0x1da   :  { %v1038_v3 = vpop.f32.mrf.mxu1 }
 0x1db   :  { %v1039_v59 = vadd.f32 %v1038_v3, %v1037_v23  ;;  %v722_v23 = vld [vmem:[%s2037_s5 + $0xf0] sm:$0xff]  ;;  %v2055_v3 = vunpack.c.h.bf16 %v1345_v5  ;;  %v720_v5 = vld [vmem:[%s2037_s5 + $0xe0] sm:$0xff] }
 0x1dc   :  { %v1040_v22 = vpop.f32.mrf.mxu1 }
 0x1dd   :  { %v497_v33 = vadd.f32 %v1039_v59, %v896_v61 }
 0x1de   :  { %v1041_v50 = vpop.f32.mrf.mxu1 }
 0x1df   :  { %v1042_v12 = vadd.f32 %v1041_v50, %v1040_v22  ;;  %v706_v50 = vld [vmem:[%s2037_s5 + $0x70] sm:$0xff] }
 0x1e0   :  { %v1043_v1 = vpop.f32.mrf.mxu1 }
 0x1e1   :  { %v502_v45 = vadd.f32 %v1042_v12, %v896_v61  ;;  %v487_v12 = vadd.f32 %v1033_v38, %v896_v61 }
 0x1e2   :  { %v1044_v55 = vpop.f32.mrf.mxu1 }
 0x1e3   :  { %v1045_v25 = vadd.f32 %v1044_v55, %v1043_v1  ;;  %v1742_v22 = vmax.f32 %v502_v45, 0.0  ;;  %v1021_v45 = vadd.f32 %v1020_v2, %v1019_v15  ;;  %v2056_v1 = vunpack.c.l.bf16 %v1461_v29  ;;  %v721_v55 = vld [vmem:[%s2037_s5 + $0xe8] sm:$0xff] }
 0x1e4   :  { %v1046_v36 = vpop.f32.mrf.mxu1 }
 0x1e5   :  { %v507_v54 = vadd.f32 %v1045_v25, %v896_v61 }
 0x1e6   :  { %v1047_v21 = vpop.f32.mrf.mxu1 }
 0x1e7   :  { %v1048_v9 = vadd.f32 %v1047_v21, %v1046_v36  ;;  %v1738_v32 = vmax.f32 %v507_v54, 0.0  ;;  %v1030_v21 = vadd.f32 %v1029_v6, %v1028_v8  ;;  %v492_v36 = vadd.f32 %v1036_v47, %v896_v61 }
 0x1e8   :  { %v1024_v54 = vadd.f32 %v1023_v13, %v1022_v14  ;;  %v1754_v8 = vmax.f32 %v487_v12, 0.0  ;;  %v467_v14 = vadd.f32 %v1021_v45, %v896_v61  ;;  %v2058_v12 = vunpack.c.l.bf16 %v1483_v35 }
 0x1e9   :  { %v512_v52 = vadd.f32 %v1048_v9, %v896_v61  ;;  %v1027_v9 = vadd.f32 %v1026_v24, %v1025_v11  ;;  %v482_v59 = vadd.f32 %v1030_v21, %v896_v61  ;;  %v1750_v25 = vmax.f32 %v492_v36, 0.0  ;;  %v705_v21 = vld [vmem:[%s2037_s5 + $0x68] sm:$0xff] }
 0x1ea   :  { %v472_v38 = vadd.f32 %v1024_v54, %v896_v61  ;;  %v452_v24 = vadd.f32 %v1729_v19, %v896_v61  ;;  %v437_v19 = vadd.f32 %v1723_v4, %v896_v61  ;;  %v707_v4 = vld [vmem:[%s2037_s5 + $0x78] sm:$0xff]  ;;  %v2057_v36 = vunpack.c.h.bf16 %v1461_v29  ;;  %v718_v29 = vld [vmem:[%s2037_s5 + $0xd0] sm:$0xff] }
 0x1eb   :  { %v1736_v40 = vmax.f32 %v512_v52, 0.0  ;;  %v1746_v52 = vmax.f32 %v497_v33, 0.0  ;;  %v477_v47 = vadd.f32 %v1027_v9, %v896_v61  ;;  %v1018_v33 = vadd.f32 %v1017_v58, %v1016_v0  ;;  %v704_v9 = vld [vmem:[%s2037_s5 + $0x60] sm:$0xff]  ;;  %v719_v54 = vld [vmem:[%s2037_s5 + $0xd8] sm:$0xff] }
 0x1ec   :  { %v1758_v11 = vmax.f32 %v482_v59, 0.0  ;;  %v1766_v2 = vmax.f32 %v472_v38, 0.0  ;;  %v457_v0 = vadd.f32 %v1731_v18, %v896_v61  ;;  %v1771_v58 = vmax.f32 %v467_v14, 0.0  ;;  %v703_v59 = vld [vmem:[%s2037_s5 + $0x58] sm:$0xff]  ;;  %v717_v38 = vld [vmem:[%s2037_s5 + $0xc8] sm:$0xff] }
 0x1ed   :  { %1217 = vmatprep.subr.mxu0 %v1736_v40  ;;  %v1762_v13 = vmax.f32 %v477_v47, 0.0  ;;  %v462_v15 = vadd.f32 %v1018_v33, %v896_v61  ;;  %v442_v18 = vadd.f32 %v1725_v43, %v896_v61  ;;  %v1786_v39 = vmax.f32 %v452_v24, 0.0  ;;  %v723_v61 = vld [vmem:[%s2037_s5 + $0xf8] sm:$0xff]  ;;  %v702_v47 = vld [vmem:[%s2037_s5 + $0x50] sm:$0xff]  ;;  %v701_v14 = vld [vmem:[%s2037_s5 + $0x48] sm:$0xff] }
 0x1ee   :  { %1218 = vmatpush3.msra.mxu0 %v1736_v40  ;;  %v1781_v27 = vmax.f32 %v457_v0, 0.0  ;;  %v1799_v43 = vmax.f32 %v437_v19, 0.0  ;;  %v2059_v45 = vunpack.c.h.bf16 %v1483_v35  ;;  %v2060_v33 = vunpack.c.l.bf16 %v1507_v42  ;;  %v716_v35 = vld [vmem:[%s2037_s5 + $0xc0] sm:$0xff] }
 0x1ef   :  { %1219 = vmatprep.subr.mxu0 %v1738_v32  ;;  %v1776_v6 = vmax.f32 %v462_v15, 0.0  ;;  %v1795_v46 = vmax.f32 %v442_v18, 0.0  ;;  %v2061_v15 = vunpack.c.h.bf16 %v1507_v42  ;;  %v700_v0 = vld [vmem:[%s2037_s5 + $0x40] sm:$0xff]  ;;  %v2062_v24 = vunpack.c.l.bf16 %v1530_v49  ;;  %v699_v18 = vld [vmem:[%s2037_s5 + $0x38] sm:$0xff]  ;;  %v714_v42 = vld [vmem:[%s2037_s5 + $0xb0] sm:$0xff] }
 0x1f0   :  { %1220 = vmatpush3.msra.mxu0 %v1738_v32  ;;  %v2063_v19 = vunpack.c.h.bf16 %v1530_v49  ;;  %v712_v49 = vld [vmem:[%s2037_s5 + $0xa0] sm:$0xff] }
 0x1f1   :  { %1221 = vmatprep.subr.mxu0 %v1742_v22 }
 0x1f2   :  { %1222 = vmatpush3.msra.mxu0 %v1742_v22 }
 0x1f3   :  { %1223 = vmatprep.subr.mxu0 %v1746_v52 }
 0x1f4   :  { %1224 = vmatpush3.msra.mxu0 %v1746_v52 }
 0x1f5   :  { %1225 = vmatprep.subr.mxu0 %v1750_v25 }
 0x1f6   :  { %1226 = vmatpush3.msra.mxu0 %v1750_v25 }
 0x1f7   :  { %1227 = vmatprep.subr.mxu0 %v1754_v8 }
 0x1f8   :  { %1228 = vmatpush3.msra.mxu0 %v1754_v8 }
 0x1f9   :  { %1229 = vmatprep.subr.mxu0 %v1758_v11 }
 0x1fa   :  { %1230 = vmatpush3.msra.mxu0 %v1758_v11 }
 0x1fb   :  { %1231 = vmatprep.subr.mxu0 %v1762_v13 }
 0x1fc   :  { %1232 = vmatpush3.msra.mxu0 %v1762_v13 }
 0x1fd   :  { %1233 = vmatprep.subr.mxu0 %v1766_v2 }
 0x1fe   :  { %1234 = vmatpush3.msra.mxu0 %v1766_v2 }
 0x1ff   :  { %1235 = vmatprep.subr.mxu0 %v1771_v58 }
 0x200   :  { %1236 = vmatpush3.msra.mxu0 %v1771_v58 }
 0x201   :  { %1237 = vmatprep.subr.mxu0 %v1776_v6 }
 0x202   :  { %1238 = vmatpush3.msra.mxu0 %v1776_v6 }
 0x203   :  { %1239 = vmatprep.subr.mxu0 %v1781_v27 }
 0x204   :  { %1240 = vmatpush3.msra.mxu0 %v1781_v27 }
 0x205   :  { %1241 = vmatprep.subr.mxu0 %v1786_v39 }
 0x206   :  { %1242 = vmatpush3.msra.mxu0 %v1786_v39 }
 0x207   :  { %1243 = vmatprep.subr.mxu0 %v1791_v26 }
 0x208   :  { %1244 = vmatpush3.msra.mxu0 %v1791_v26 }
 0x209   :  { %1245 = vmatprep.subr.mxu0 %v1795_v46 }
 0x20a   :  { %1246 = vmatpush3.msra.mxu0 %v1795_v46 }
 0x20b   :  { %1247 = vmatprep.subr.mxu0 %v1799_v43 }
 0x20c   :  { %1248 = vmatpush3.msra.mxu0 %v1799_v43 }
 0x20d   :  { %1250 = vmatmul.mubr.f32.vlgmr.msra.gmra.mxu0 %v2055_v3  ;;  %1081 = vmatprep.subr.mxu0 %v723_v61  ;;  %v698_v61 = vld [vmem:[%s2037_s5 + $0x30] sm:$0xff]  ;;  %v697_v3 = vld [vmem:[%s2037_s5 + $0x28] sm:$0xff] }
 0x20e   :  { %1252 = vmatprep.mubr.f32.mxu0 %v2056_v1  ;;  %1082 = vmatpush3.msra.mxu0 %v707_v4  ;;  %v2064_v4 = vunpack.c.l.bf16 %v1553_v56  ;;  %v696_v1 = vld [vmem:[%s2037_s5 + $0x20] sm:$0xff] }
 0x20f   :  { %1083 = vmatprep.subr.mxu0 %v722_v23  ;;  %v713_v23 = vld [vmem:[%s2037_s5 + $0xa8] sm:$0xff] }
 0x210   :  { %1084 = vmatpush3.msra.mxu0 %v706_v50  ;;  %v2065_v50 = vunpack.c.h.bf16 %v1553_v56  ;;  %v710_v56 = vld [vmem:[%s2037_s5 + $0x90] sm:$0xff] }
 0x211   :  { %1253 = vmatmul.mubr.f32.gmra.mxu0 %v2057_v36  ;;  %1085 = vmatprep.subr.mxu0 %v721_v55  ;;  %v2066_v55 = vunpack.c.l.bf16 %v1576_v63  ;;  %v2067_v36 = vunpack.c.h.bf16 %v1576_v63  ;;  %v693_v63 = vld [vmem:[%s2037_s5 + $0x8] sm:$0xff] }
 0x212   :  { %1255 = vmatprep.mubr.f32.mxu0 %v2058_v12  ;;  %1086 = vmatpush3.msra.mxu0 %v705_v21  ;;  %v711_v21 = vld [vmem:[%s2037_s5 + $0x98] sm:$0xff]  ;;  %v2069_v12 = vunpack.c.h.bf16 %v1599_v16 }
 0x213   :  { %1087 = vmatprep.subr.mxu0 %v720_v5  ;;  %v695_v5 = vld [vmem:[%s2037_s5 + $0x18] sm:$0xff] }
 0x214   :  { %1088 = vmatpush3.msra.mxu0 %v704_v9  ;;  %v2068_v9 = vunpack.c.l.bf16 %v1599_v16  ;;  %v708_v16 = vld [vmem:[%s2037_s5 + $0x80] sm:$0xff] }
 0x215   :  { %1256 = vmatmul.mubr.f32.gmra.mxu0 %v2059_v45  ;;  %1089 = vmatprep.subr.mxu0 %v719_v54  ;;  %v694_v54 = vld [vmem:[%s2037_s5 + $0x10] sm:$0xff] }
 0x216   :  { %1258 = vmatprep.mubr.f32.mxu0 %v2060_v33  ;;  %1090 = vmatpush3.msra.mxu0 %v703_v59  ;;  %v709_v59 = vld [vmem:[%s2037_s5 + $0x88] sm:$0xff] }
 0x217   :  { %1091 = vmatprep.subr.mxu0 %v718_v29  ;;  %v692_v29 = vld [vmem:[%s2037_s5] sm:$0xff] }
 0x218   :  { %1092 = vmatpush3.msra.mxu0 %v702_v47 }
 0x219   :  { %1259 = vmatmul.mubr.f32.gmra.mxu0 %v2061_v15  ;;  %1093 = vmatprep.subr.mxu0 %v717_v38 }
 0x21a   :  { %1261 = vmatprep.mubr.f32.mxu0 %v2062_v24  ;;  %1094 = vmatpush3.msra.mxu0 %v701_v14 }
 0x21b   :  { %1095 = vmatprep.subr.mxu0 %v716_v35 }
 0x21c   :  { %1096 = vmatpush3.msra.mxu0 %v700_v0 }
 0x21d   :  { %1262 = vmatmul.mubr.f32.gmra.mxu0 %v2063_v19  ;;  %1097 = vmatprep.subr.mxu0 %v715_v31 }
 0x21e   :  { %1264 = vmatprep.mubr.f32.mxu0 %v2064_v4  ;;  %1098 = vmatpush3.msra.mxu0 %v699_v18 }
 0x21f   :  { %1099 = vmatprep.subr.mxu0 %v714_v42 }
 0x220   :  { %1100 = vmatpush3.msra.mxu0 %v698_v61 }
 0x221   :  { %1265 = vmatmul.mubr.f32.gmra.mxu0 %v2065_v50  ;;  %1101 = vmatprep.subr.mxu0 %v713_v23 }
 0x222   :  { %1267 = vmatprep.mubr.f32.mxu0 %v2066_v55  ;;  %1102 = vmatpush3.msra.mxu0 %v697_v3 }
 0x223   :  { %1103 = vmatprep.subr.mxu0 %v712_v49 }
 0x224   :  { %1104 = vmatpush3.msra.mxu0 %v696_v1 }
 0x225   :  { %1268 = vmatmul.mubr.f32.gmra.mxu0 %v2067_v36  ;;  %1105 = vmatprep.subr.mxu0 %v711_v21 }
 0x226   :  { %1270 = vmatprep.mubr.f32.mxu0 %v2068_v9  ;;  %1106 = vmatpush3.msra.mxu0 %v695_v5 }
 0x227   :  { %1107 = vmatprep.subr.mxu0 %v710_v56 }
 0x228   :  { %1108 = vmatpush3.msra.mxu0 %v694_v54 }
 0x229   :  { %1271 = vmatmul.mubr.f32.gmra.mxu0 %v2069_v12  ;;  %1109 = vmatprep.subr.mxu0 %v709_v59 }
 0x22a   :  { %1110 = vmatpush3.msra.mxu0 %v693_v63 }
 0x22b   :  { %1111 = vmatprep.subr.mxu0 %v708_v16 }
 0x22c   :  { %1112 = vmatpush3.msra.mxu0 %v692_v29 }
 0x2cd   :  { %v1251_v45 = vpop.f32.mrf.mxu0 }
 0x2ce   :  { %v677_v14 = vmul.f32 %v1251_v45, %v1662_v60 }
 0x2cf   :  { %v597_v47 = vpop.f32.mrf.mxu0 }
 0x2d0   :  { %v676_v33 = vmul.f32 %v597_v47, %v1659_v53 }
 0x2d1   :  { %v1254_v38 = vpop.f32.mrf.mxu0 }
 0x2d2   :  { %795 = vmatprep.mubr.f32.mxu0 %v676_v33  ;;  %v679_v24 = vmul.f32 %v1254_v38, %v1670_v20 }
 0x2d3   :  { %v607_v35 = vpop.f32.mrf.mxu0  ;;  %796 = vmatmul.mubr.f32.vlgmr.msra.gmra.mxu0 %v1799_v43 }
 0x2d4   :  { %800 = vmatprep.mubr.f32.mxu0 %v677_v14  ;;  %v678_v15 = vmul.f32 %v607_v35, %v1665_v7 }
 0x2d5   :  { %v1257_v0 = vpop.f32.mrf.mxu0 }
 0x2d6   :  { %v681_v43 = vmul.f32 %v1257_v0, %v1678_v37 }
 0x2d7   :  { %801 = vmatmul.mubr.f32.gmra.mxu0 %v1795_v46  ;;  %v617_v31 = vpop.f32.mrf.mxu0 }
 0x2d8   :  { %805 = vmatprep.mubr.f32.mxu0 %v678_v15  ;;  %v680_v53 = vmul.f32 %v617_v31, %v1674_v30 }
 0x2d9   :  { %v1260_v60 = vpop.f32.mrf.mxu0 }
 0x2da   :  { %v683_v20 = vmul.f32 %v1260_v60, %v1686_v44 }
 0x2db   :  { %806 = vmatmul.mubr.f32.gmra.mxu0 %v1791_v26  ;;  %v627_v18 = vpop.f32.mrf.mxu0 }
 0x2dc   :  { %810 = vmatprep.mubr.f32.mxu0 %v679_v24  ;;  %v682_v7 = vmul.f32 %v627_v18, %v1682_v41 }
 0x2dd   :  { %v1263_v46 = vpop.f32.mrf.mxu0 }
 0x2de   :  { %v685_v37 = vmul.f32 %v1263_v46, %v1694_v51 }
 0x2df   :  { %811 = vmatmul.mubr.f32.gmra.mxu0 %v1786_v39  ;;  %v637_v26 = vpop.f32.mrf.mxu0 }
 0x2e0   :  { %815 = vmatprep.mubr.f32.mxu0 %v680_v53  ;;  %v684_v30 = vmul.f32 %v637_v26, %v1690_v48 }
 0x2e1   :  { %v1266_v39 = vpop.f32.mrf.mxu0 }
 0x2e2   :  { %v687_v44 = vmul.f32 %v1266_v39, %v1702_v62 }
 0x2e3   :  { %816 = vmatmul.mubr.f32.gmra.mxu0 %v1781_v27  ;;  %v647_v27 = vpop.f32.mrf.mxu0 }
 0x2e4   :  { %820 = vmatprep.mubr.f32.mxu0 %v681_v43  ;;  %v686_v41 = vmul.f32 %v647_v27, %v1698_v57 }
 0x2e7   :  { %821 = vmatmul.mubr.f32.gmra.mxu0 %v1776_v6  ;;  %v1269_v6 = vpop.f32.mrf.mxu0 }
 0x2e8   :  { %825 = vmatprep.mubr.f32.mxu0 %v682_v7  ;;  %v689_v51 = vmul.f32 %v1269_v6, %v1710_v17  ;;  %v1966_v17 = vld [vmem:[%s2038_s6] ss:$0 sm:$0xff] }
 0x2eb   :  { %826 = vmatmul.mubr.f32.gmra.mxu0 %v1771_v58  ;;  %v657_v58 = vpop.f32.mrf.mxu0 }
 0x2ec   :  { %830 = vmatprep.mubr.f32.mxu0 %v683_v20  ;;  %v688_v48 = vmul.f32 %v657_v58, %v1706_v10 }
 0x2ef   :  { %831 = vmatmul.mubr.f32.gmra.mxu0 %v1766_v2  ;;  %v1272_v2 = vpop.f32.mrf.mxu0 }
 0x2f0   :  { %835 = vmatprep.mubr.f32.mxu0 %v684_v30  ;;  %v691_v62 = vmul.f32 %v1272_v2, %v1718_v34 }
 0x2f3   :  { %836 = vmatmul.mubr.f32.gmra.mxu0 %v1762_v13  ;;  %v667_v13 = vpop.f32.mrf.mxu0 }
 0x2f4   :  { %840 = vmatprep.mubr.f32.mxu0 %v685_v37  ;;  %v690_v57 = vmul.f32 %v667_v13, %v1714_v28 }
 0x2f7   :  { %841 = vmatmul.mubr.f32.gmra.mxu0 %v1758_v11 }
 0x2f8   :  { %845 = vmatprep.mubr.f32.mxu0 %v686_v41 }
 0x2fb   :  { %846 = vmatmul.mubr.f32.gmra.mxu0 %v1754_v8 }
 0x2fc   :  { %850 = vmatprep.mubr.f32.mxu0 %v687_v44 }
 0x2ff   :  { %851 = vmatmul.mubr.f32.gmra.mxu0 %v1750_v25 }
 0x300   :  { %855 = vmatprep.mubr.f32.mxu0 %v688_v48 }
 0x303   :  { %856 = vmatmul.mubr.f32.gmra.mxu0 %v1746_v52 }
 0x304   :  { %860 = vmatprep.mubr.f32.mxu0 %v689_v51 }
 0x307   :  { %861 = vmatmul.mubr.f32.gmra.mxu0 %v1742_v22 }
 0x308   :  { %865 = vmatprep.mubr.f32.mxu0 %v690_v57 }
 0x30b   :  { %866 = vmatmul.mubr.f32.gmra.mxu0 %v1738_v32 }
 0x30c   :  { %870 = vmatprep.mubr.f32.mxu0 %v691_v62 }
 0x30f   :  { %871 = vmatmul.mubr.f32.gmra.mxu0 %v1736_v40 }
 0x393   :  { %v1113_v10 = vpop.f32.mrf.mxu0 }
 0x395   :  { %v1114_v52 = vpop.f32.mrf.mxu0 }
 0x396   :  { %v1115_v25 = vadd.f32 %v1114_v52, %v1113_v10 }
 0x397   :  { %v1116_v8 = vpop.f32.mrf.mxu0 }
 0x398   :  { %v798_v28 = vadd.f32 %v1115_v25, %v1966_v17 }
 0x399   :  { %v1117_v22 = vpop.f32.mrf.mxu0 }
 0x39a   :  { %876 = vst [vmem:[%s2039_s7] sm:$0xff] %v798_v28  ;;  %v1118_v32 = vadd.f32 %v1117_v22, %v1116_v8 }
 0x39b   :  { %v1119_v34 = vpop.f32.mrf.mxu0 }
 0x39c   :  { %v803_v40 = vadd.f32 %v1118_v32, %v1966_v17 }
 0x39d   :  { %v1120_v11 = vpop.f32.mrf.mxu0 }
 0x39e   :  { %877 = vst [vmem:[%s2039_s7 + $0x8] sm:$0xff] %v803_v40  ;;  %v1121_v42 = vadd.f32 %v1120_v11, %v1119_v34 }
 0x39f   :  { %v1122_v19 = vpop.f32.mrf.mxu0 }
 0x3a0   :  { %v808_v61 = vadd.f32 %v1121_v42, %v1966_v17 }
 0x3a1   :  { %v1123_v4 = vpop.f32.mrf.mxu0 }
 0x3a2   :  { %878 = vst [vmem:[%s2039_s7 + $0x10] sm:$0xff] %v808_v61  ;;  %v1124_v23 = vadd.f32 %v1123_v4, %v1122_v19 }
 0x3a3   :  { %v1125_v3 = vpop.f32.mrf.mxu0 }
 0x3a4   :  { %v813_v49 = vadd.f32 %v1124_v23, %v1966_v17 }
 0x3a5   :  { %v1126_v50 = vpop.f32.mrf.mxu0 }
 0x3a6   :  { %879 = vst [vmem:[%s2039_s7 + $0x18] sm:$0xff] %v813_v49  ;;  %v1127_v1 = vadd.f32 %v1126_v50, %v1125_v3 }
 0x3a7   :  { %v1128_v55 = vpop.f32.mrf.mxu0 }
 0x3a8   :  { %v818_v21 = vadd.f32 %v1127_v1, %v1966_v17 }
 0x3a9   :  { %v1129_v5 = vpop.f32.mrf.mxu0 }
 0x3aa   :  { %880 = vst [vmem:[%s2039_s7 + $0x20] sm:$0xff] %v818_v21  ;;  %v1130_v56 = vadd.f32 %v1129_v5, %v1128_v55 }
 0x3ab   :  { %v1131_v36 = vpop.f32.mrf.mxu0 }
 0x3ac   :  { %v823_v9 = vadd.f32 %v1130_v56, %v1966_v17 }
 0x3ad   :  { %v1132_v12 = vpop.f32.mrf.mxu0 }
 0x3ae   :  { %881 = vst [vmem:[%s2039_s7 + $0x28] sm:$0xff] %v823_v9  ;;  %v1133_v54 = vadd.f32 %v1132_v12, %v1131_v36 }
 0x3af   :  { %v1134_v59 = vpop.f32.mrf.mxu0 }
 0x3b0   :  { %v828_v63 = vadd.f32 %v1133_v54, %v1966_v17 }
 0x3b1   :  { %v1135_v16 = vpop.f32.mrf.mxu0 }
 0x3b2   :  { %882 = vst [vmem:[%s2039_s7 + $0x30] sm:$0xff] %v828_v63  ;;  %v1136_v29 = vadd.f32 %v1135_v16, %v1134_v59 }
 0x3b3   :  { %v1137_v45 = vpop.f32.mrf.mxu0 }
 0x3b4   :  { %v833_v47 = vadd.f32 %v1136_v29, %v1966_v17 }
 0x3b5   :  { %v1138_v33 = vpop.f32.mrf.mxu0 }
 0x3b6   :  { %883 = vst [vmem:[%s2039_s7 + $0x38] sm:$0xff] %v833_v47  ;;  %v1139_v38 = vadd.f32 %v1138_v33, %v1137_v45 }
 0x3b7   :  { %v1140_v14 = vpop.f32.mrf.mxu0 }
 0x3b8   :  { %v838_v35 = vadd.f32 %v1139_v38, %v1966_v17 }
 0x3b9   :  { %v1141_v15 = vpop.f32.mrf.mxu0 }
 0x3ba   :  { %884 = vst [vmem:[%s2039_s7 + $0x40] sm:$0xff] %v838_v35  ;;  %v1142_v0 = vadd.f32 %v1141_v15, %v1140_v14 }
 0x3bb   :  { %v1143_v24 = vpop.f32.mrf.mxu0 }
 0x3bc   :  { %v843_v31 = vadd.f32 %v1142_v0, %v1966_v17 }
 0x3bd   :  { %v1144_v53 = vpop.f32.mrf.mxu0 }
 0x3be   :  { %885 = vst [vmem:[%s2039_s7 + $0x48] sm:$0xff] %v843_v31  ;;  %v1145_v60 = vadd.f32 %v1144_v53, %v1143_v24 }
 0x3bf   :  { %v1146_v43 = vpop.f32.mrf.mxu0 }
 0x3c0   :  { %v848_v18 = vadd.f32 %v1145_v60, %v1966_v17 }
 0x3c1   :  { %v1147_v7 = vpop.f32.mrf.mxu0 }
 0x3c2   :  { %886 = vst [vmem:[%s2039_s7 + $0x50] sm:$0xff] %v848_v18  ;;  %v1148_v46 = vadd.f32 %v1147_v7, %v1146_v43 }
 0x3c3   :  { %v1149_v20 = vpop.f32.mrf.mxu0 }
 0x3c4   :  { %v853_v26 = vadd.f32 %v1148_v46, %v1966_v17 }
 0x3c5   :  { %v1150_v30 = vpop.f32.mrf.mxu0 }
 0x3c6   :  { %887 = vst [vmem:[%s2039_s7 + $0x58] sm:$0xff] %v853_v26  ;;  %v1151_v39 = vadd.f32 %v1150_v30, %v1149_v20 }
 0x3c7   :  { %v1152_v37 = vpop.f32.mrf.mxu0 }
 0x3c8   :  { %v858_v27 = vadd.f32 %v1151_v39, %v1966_v17 }
 0x3c9   :  { %v1153_v41 = vpop.f32.mrf.mxu0 }
 0x3ca   :  { %888 = vst [vmem:[%s2039_s7 + $0x60] sm:$0xff] %v858_v27  ;;  %v1154_v6 = vadd.f32 %v1153_v41, %v1152_v37 }
 0x3cb   :  { %v1155_v44 = vpop.f32.mrf.mxu0 }
 0x3cc   :  { %v863_v58 = vadd.f32 %v1154_v6, %v1966_v17 }
 0x3cd   :  { %v1156_v48 = vpop.f32.mrf.mxu0 }
 0x3ce   :  { %889 = vst [vmem:[%s2039_s7 + $0x68] sm:$0xff] %v863_v58  ;;  %v1157_v2 = vadd.f32 %v1156_v48, %v1155_v44 }
 0x3cf   :  { %v1158_v51 = vpop.f32.mrf.mxu0 }
 0x3d0   :  { %v868_v13 = vadd.f32 %v1157_v2, %v1966_v17 }
 0x3d1   :  { %v1159_v57 = vpop.f32.mrf.mxu0 }
 0x3d2   :  { %890 = vst [vmem:[%s2039_s7 + $0x70] sm:$0xff] %v868_v13  ;;  %v1160_v62 = vadd.f32 %v1159_v57, %v1158_v51 }
 0x3d4   :  { %v873_v10 = vadd.f32 %v1160_v62, %v1966_v17 }
 0x3d6   :  { %891 = vst [vmem:[%s2039_s7 + $0x78] sm:$0xff] %v873_v10 }

</bundles_post_ra>
